<compile_context>
chip_gen: v7x
topology: tpu7x:2x2x1
jax: 0.10.0
libtpu: 0.0.40
codegen_flags: <defaults>
</compile_context>

<pallas_src>
import jax
import jax.numpy as jnp
from jax.experimental import pallas as pl
from jax.experimental.pallas import tpu as pltpu


_LANE = 128
_SUBLANE = 8
_VMEM_LIMIT = 48 * 1024 * 1024          # < v7x 64 MiB physical VMEM
# One "block-equivalent" budget.  Peak VMEM ~= 2x in-block + 2x out-block
# (double buffering) + ~5-7 block-sized f32 temporaries (row sums/diffs,
# column taps, gx/gy/mag) ~= 11-12 block-equivalents.
_BLOCK_BUDGET = _VMEM_LIMIT // 12
# Below this many output rows a single image is not worth row-tiling.
_MIN_ROWS_FOR_TILING = 128


def _round_up(x: int, m: int) -> int:
    return (x + m - 1) // m * m


def _cdiv(a: int, b: int) -> int:
    return (a + b - 1) // b


def _sobel_kernel(x_ref, o_ref):
    """x_ref: (bn, hin, win) any float dtype; o_ref: (bn, hout, wout) f32.

    Separable, constant-folded Sobel (PyTorch Conv2d == cross-correlation):
        S(j) = x0 + 2*x1 + x2     vertical [1,2,1] blur   (rows i, i+1, i+2)
        D(j) = x0 - x2            vertical [1,0,-1] diff
        Gx   = 2 * (S(j) - S(j+2))
        Gy   = 2 * (D(j) + 2*D(j+1) + D(j+2))
        out  = sqrt(Gx^2 + Gy^2) = 2 * sqrt(gx^2 + gy^2)
    Column taps are static lane-offset slices whose width equals the output
    block width, so the store is exactly the output block (nothing to discard,
    no wrapper-side slicing afterwards).
    """
    hout = o_ref.shape[1]
    wout = o_ref.shape[2]

    # Three row-shifted views straight from VMEM (sublane-offset loads); cast
    # to f32 in VMEM so narrow input dtypes get DMA'd narrow.
    x0 = x_ref[:, pl.ds(0, hout), :].astype(jnp.float32)
    x1 = x_ref[:, pl.ds(1, hout), :].astype(jnp.float32)
    x2 = x_ref[:, pl.ds(2, hout), :].astype(jnp.float32)

    s = x0 + x1 + x1 + x2            # vertical [1,2,1]  (for Gx)
    d = x0 - x2                      # vertical [1,0,-1] (for Gy)

    gx = s[:, :, 0:wout] - s[:, :, 2:wout + 2]
    d1 = d[:, :, 1:wout + 1]
    gy = d[:, :, 0:wout] + d1 + d1 + d[:, :, 2:wout + 2]

    # Common factor 2 of both filters folded into one multiply after the sqrt.
    o_ref[...] = (2.0 * jnp.sqrt(gx * gx + gy * gy)).astype(o_ref.dtype)


def sobel_pallas(img: jax.Array) -> jax.Array:
    """img: (N, 1, H, W) -> (N, 1, H-2, W-2) float32 Sobel magnitude."""
    N, C, H, W = img.shape
    assert C == 1, "Sobel module is defined for a single input channel"
    assert H >= 3 and W >= 3
    Ho, Wo = H - 2, W - 2
    x = img.reshape(N, H, W)                       # metadata-only: drop channel dim

    # f32-equivalent VMEM footprint of one whole-image block (vreg-padded).
    per_img = _round_up(H, _SUBLANE) * _round_up(W, _LANE) * 4

    whole_image_fits = per_img <= _BLOCK_BUDGET
    route_to_row_tiles = (N == 1 and Ho >= _MIN_ROWS_FOR_TILING)

    if whole_image_fits and not route_to_row_tiles:
        # ---- Path 1: whole image(s) per grid step, batch-blocked. ----
        bn = max(1, min(_BLOCK_BUDGET // per_img, N))
        if N >= 2:
            bn = min(bn, N // 2)      # >=2 grid steps: v7x dual-TC + pipeline overlap
        while N % bn:
            bn -= 1                   # bn | N  -> no batch-padding HBM round trip
        out = pl.pallas_call(
            _sobel_kernel,
            out_shape=jax.ShapeDtypeStruct((N, Ho, Wo), jnp.float32),
            grid_spec=pltpu.PrefetchScalarGridSpec(
                num_scalar_prefetch=0,
                grid=(N // bn,),
                in_specs=[pl.BlockSpec((bn, H, W), lambda b: (b, 0, 0))],
                out_specs=pl.BlockSpec((bn, Ho, Wo), lambda b: (b, 0, 0)),
            ),
            compiler_params=pltpu.CompilerParams(
                dimension_semantics=("parallel",),
                vmem_limit_bytes=_VMEM_LIMIT),
        )(x)
        return out.reshape(N, 1, Ho, Wo)

    # ---- Path 2: large images -- row tiles with an 8-row halo window. ----
    wp = _round_up(W, _LANE)
    th = max(_SUBLANE, ((_BLOCK_BUDGET // (4 * wp) - 8) // _SUBLANE) * _SUBLANE)
    if N == 1:
        # Guarantee >=2 row tiles so both v7x TensorCores get work.
        th = min(th, max(_SUBLANE, _round_up(_cdiv(Ho, 2), _SUBLANE)))
    n_tiles = _cdiv(Ho, th)
    th = max(_SUBLANE, _round_up(_cdiv(Ho, n_tiles), _SUBLANE))    # rebalance tiles
    n_tiles = _cdiv(Ho, th)

    hin_need = (n_tiles - 1) * th + (th + 8)   # rows touched by the last halo window
    if hin_need > H:
        # TODO(synk): the sublane-aligned halo window needs a few zero rows at
        # the bottom; this pad is one extra HBM pass over the rare huge-image
        # path only (rows >= Ho produced from it are dropped by the partial
        # last output block).
        x = jnp.pad(x, ((0, 0), (0, hin_need - H), (0, 0)))

    out = pl.pallas_call(
        _sobel_kernel,
        out_shape=jax.ShapeDtypeStruct((N, Ho, Wo), jnp.float32),
        grid_spec=pltpu.PrefetchScalarGridSpec(
            num_scalar_prefetch=0,
            grid=(N, n_tiles),
            in_specs=[pl.BlockSpec((1, pl.Element(th + 8), W),
                                   lambda b, r: (b, r * th, 0))],
            out_specs=pl.BlockSpec((1, th, Wo), lambda b, r: (b, r, 0)),
        ),
        compiler_params=pltpu.CompilerParams(
            dimension_semantics=("parallel", "parallel"),
            vmem_limit_bytes=_VMEM_LIMIT),
    )(x)
    return out.reshape(N, 1, Ho, Wo)


def _make_sobel_weights() -> jax.Array:
    # Matches the PyTorch __init__ exactly: shape (2, 1, 3, 3).
    Gx = jnp.array([[2.0, 0.0, -2.0],
                    [4.0, 0.0, -4.0],
                    [2.0, 0.0, -2.0]], dtype=jnp.float32)
    Gy = jnp.array([[2.0, 4.0, 2.0],
                    [0.0, 0.0, 0.0],
                    [-2.0, -4.0, -2.0]], dtype=jnp.float32)
    return jnp.stack([Gx, Gy], axis=0)[:, None, :, :]


def _sobel_reference(img: jax.Array, weights: jax.Array) -> jax.Array:
    # Plain-JAX reference mirroring the PyTorch forward (NCHW conv, VALID).
    x = jax.lax.conv_general_dilated(
        img.astype(jnp.float32), weights, window_strides=(1, 1), padding="VALID",
        dimension_numbers=("NCHW", "OIHW", "NCHW"))
    x = x * x
    x = jnp.sum(x, axis=1, keepdims=True)
    return jnp.sqrt(x)


if __name__ == "__main__":
    key = jax.random.PRNGKey(0)
    N, C, H, W = 2, 1, 16, 16   # Sobel module implies in_channels=1
    img = jax.random.normal(key, (N, C, H, W), dtype=jnp.float32)

    out = jax.block_until_ready(sobel_pallas(img))
    ref = _sobel_reference(img, _make_sobel_weights())

    assert out.shape == (N, 1, H - 2, W - 2), out.shape
    assert out.dtype == jnp.float32
    assert bool(jnp.allclose(out, ref, atol=1e-4, rtol=1e-4)), "mismatch vs reference"

    print("KERNEL_OK")
</pallas_src>

<mosaic_0001>
module attributes {stable_mosaic.version = 11 : i64} {
  func.func @_sobel_kernel(%arg0: i32, %arg1: memref<1x16x16xf32, #tpu.memory_space<vmem>>, %arg2: memref<1x14x14xf32, #tpu.memory_space<vmem>>) attributes {dimension_semantics = [#tpu.dimension_semantics<parallel>], iteration_bounds = array<i64: 2>, scalar_prefetch = 0 : i64, scratch_operands = 0 : i64, tpu.core_type = #tpu.core_type<tc>, window_params = [{transform_indices = @transform_0, window_bounds = array<i64: 1, 16, 16>}, {transform_indices = @transform_1, window_bounds = array<i64: 1, 14, 14>}]} {
    %c0 = arith.constant 0 : index
    %c0_0 = arith.constant 0 : index
    %c0_1 = arith.constant 0 : index
    %0 = vector.load %arg1[%c0, %c0_0, %c0_1] : memref<1x16x16xf32, #tpu.memory_space<vmem>>, vector<1x14x16xf32>
    %c0_2 = arith.constant 0 : index
    %c1 = arith.constant 1 : index
    %c0_3 = arith.constant 0 : index
    %1 = vector.load %arg1[%c0_2, %c1, %c0_3] : memref<1x16x16xf32, #tpu.memory_space<vmem>>, vector<1x14x16xf32>
    %c0_4 = arith.constant 0 : index
    %c2 = arith.constant 2 : index
    %c0_5 = arith.constant 0 : index
    %2 = vector.load %arg1[%c0_4, %c2, %c0_5] : memref<1x16x16xf32, #tpu.memory_space<vmem>>, vector<1x14x16xf32>
    %3 = arith.addf %0, %1 : vector<1x14x16xf32>
    %4 = arith.addf %3, %1 : vector<1x14x16xf32>
    %5 = arith.addf %4, %2 : vector<1x14x16xf32>
    %6 = arith.subf %0, %2 : vector<1x14x16xf32>
    %7 = vector.extract_strided_slice %5 {offsets = [0, 0, 0], sizes = [1, 14, 14], strides = [1, 1, 1]} : vector<1x14x16xf32> to vector<1x14x14xf32>
    %8 = vector.extract_strided_slice %5 {offsets = [0, 0, 2], sizes = [1, 14, 14], strides = [1, 1, 1]} : vector<1x14x16xf32> to vector<1x14x14xf32>
    %9 = arith.subf %7, %8 : vector<1x14x14xf32>
    %10 = vector.extract_strided_slice %6 {offsets = [0, 0, 1], sizes = [1, 14, 14], strides = [1, 1, 1]} : vector<1x14x16xf32> to vector<1x14x14xf32>
    %11 = vector.extract_strided_slice %6 {offsets = [0, 0, 0], sizes = [1, 14, 14], strides = [1, 1, 1]} : vector<1x14x16xf32> to vector<1x14x14xf32>
    %12 = arith.addf %11, %10 : vector<1x14x14xf32>
    %13 = arith.addf %12, %10 : vector<1x14x14xf32>
    %14 = vector.extract_strided_slice %6 {offsets = [0, 0, 2], sizes = [1, 14, 14], strides = [1, 1, 1]} : vector<1x14x16xf32> to vector<1x14x14xf32>
    %15 = arith.addf %13, %14 : vector<1x14x14xf32>
    %16 = arith.mulf %9, %9 : vector<1x14x14xf32>
    %17 = arith.mulf %15, %15 : vector<1x14x14xf32>
    %18 = arith.addf %16, %17 : vector<1x14x14xf32>
    %19 = math.sqrt %18 : vector<1x14x14xf32>
    %cst = arith.constant 2.000000e+00 : f32
    %20 = vector.broadcast %cst : f32 to vector<1x14x14xf32>
    %21 = arith.mulf %20, %19 : vector<1x14x14xf32>
    %c0_6 = arith.constant 0 : index
    %c0_7 = arith.constant 0 : index
    %c0_8 = arith.constant 0 : index
    %22 = vector.load %arg2[%c0_6, %c0_7, %c0_8] : memref<1x14x14xf32, #tpu.memory_space<vmem>>, vector<1x14x14xf32>
    tpu.vector_store %arg2[%c0_6, %c0_7, %c0_8], %21 {strides = array<i32>} : memref<1x14x14xf32, #tpu.memory_space<vmem>>, vector<1x14x14xf32>,
    return
  }
  func.func @transform_0(%arg0: i32) -> (i32, i32, i32) {
    %c0_i32 = arith.constant 0 : i32
    %c0_i32_0 = arith.constant 0 : i32
    %c0_i32_1 = arith.constant 0 : i32
    return %arg0, %c0_i32, %c0_i32_0 : i32, i32, i32
  }
  func.func @transform_1(%arg0: i32) -> (i32, i32, i32) {
    %c0_i32 = arith.constant 0 : i32
    %c0_i32_0 = arith.constant 0 : i32
    %c0_i32_1 = arith.constant 0 : i32
    return %arg0, %c0_i32, %c0_i32_0 : i32, i32, i32
  }
}

</mosaic_0001>

<bundles_post_ra>
// kernel: tpu_custom_call.1
= control target key start
LH: loop header
LB: loop body
LE: loop exit
PB: predicated region body
PF: predicated region fallthrough
CT: control target
= control target key end

     0   :  { %6 = vsyncpa [#allocation3], 0  ;;  %s524_s0 = inlined_call_operand.hbm [shape: f32[2,16,16], index: 0, kind: input, shape index: {}]   ;;  %s525_s1 = inlined_call_operand.vmem [shape: f32[2,14,14], index: 1, kind: output, shape index: {}]  }
   0x1   :  { %8 = vsyncpa [#allocation3 + $0x1], 0  ;;  %s416_s6 = smov 0   ;;  %s418_s7 = smov 0  }
   0x2   :  { %s420_s8 = smov 0   ;;  %s422_s9 = smov 0  }
   0x3 LB: > { %s435_s10 = sadd.s32 4294967295, %s399_s9   ;;  %s438_s11 = sadd.s32 1, %s399_s9   ;;  %s399_s9 = sphi %s422_s9, %s532_s9   ;;  %s395_s8 = sphi %s420_s8, %s531_s8   ;;  %s391_s7 = sphi %s418_s7, %s530_s7   ;;  %s387_s6 = sphi %s416_s6, %s529_s6  }
   0x4   : > { %s18_s12 = ssub.s32 %s399_s9, %s438_s11  ;;  %s21_s13 = sadd.s32 1, %s395_s8 }
   0x5   : > { %p19_p0 = scmp.eq.s32.totalorder %s18_s12, 0  ;;  %p28_p1 = scmp.ne.s32.totalorder %s395_s8, %s391_s7 }
   0x6   : > { %p29_p2 = scmp.eq.s32.totalorder %s399_s9, 0  ;;  %p34_p3 = scmp.ne.s32.totalorder %s391_s7, %s387_s6 }
   0x7   : > { %s448_s14 = scalar_select %p19_p0, %s395_s8, %s21_s13  }
   0x8   : > { %p30_p4 = por %p29_p2, %p28_p1  ;;  %p35_p5 = scmp.eq.s32.totalorder %s435_s10, 0 }
   0x9   : > { %p294_p6 = scmp.lt.s32.totalorder %s399_s9, 2  ;;  %s84_s16 = sand.u32 1, %s395_s8  }
   0xa   : > { %p452_p7 = por %p35_p5, %p34_p3  ;;  %s277_s17 = sshll.u32 %s84_s16, 4 }
   0xb   : > { %s286_s18 = sshll.u32 %s399_s9, 8  ;;  %s88_s22 = scalar_lea.vmem [#allocation2], %s277_s17 }
   0xc   : > { %s461_s21 = scalar_lea.hbm %s524_s0, %s286_s18  ;;  %s95_s23 = sshll.u32 %s88_s22, 4  ;;  %s463_s23 = int_to_ptr.vmem [resolvable:$true] %s95_s23 }
   0xd   : > { %p465_p8 = pnand %p294_p6, %p30_p4  ;;  %s470_s25 = scalar_lea.sflag [#allocation3], %s84_s16 }
   0xe   : > { %s335_s26 = scalar_lea.hbm %s461_s21, 256  ;;  %s340_s29 = scalar_lea.hbm %s524_s0, 512 }
   0xf   : > { %p336_p10 = scmp.ne.s32.totalorder %s461_s21, %s335_s26  ;;  %p337_p11 = pneg %p465_p8 }
  0x10   : > { %p341_p0 = scmp.lt.u32.totalorder %s461_s21, %s524_s0  ;;  %p342_p1 = scmp.lt.u32.totalorder %s340_s29, %s335_s26 }
  0x11   : > { %p338_p12 = pnand %p337_p11, %p336_p10  ;;  %p344_p3 = scmp.lt.u32.totalorder %s335_s26, %s461_s21 }
  0x12   : > { %p343_p2 = por %p342_p1, %p341_p0 }
  0x13   : > { %p339_p13 = pneg %p338_p12 }
  0x14   : > { %p345_p4 = por %p344_p3, %p343_p2 }
  0x16   : > { %p346_p5 = pnand %p345_p4, %p339_p13 }
  0x18   : > { %349 = shalt.err (!%p346_p5)
}
  0x19   : > { %s350_s3 = scalar_lea.vmem %s463_s23, 256  ;;  %s401_s4 = smov [#allocation2]  }
  0x1a   : > { %p351_p6 = scmp.ne.s32.totalorder %s463_s23, %s350_s3  ;;  %s355_s5 = sshll.u32 %s401_s4, 4  ;;  %s356_s5 = int_to_ptr.vmem [resolvable:$false] %s355_s5 }
  0x1b   : > { %s357_s6 = scalar_lea.vmem %s356_s5, 512  ;;  %p358_p9 = scmp.lt.s32.totalorder %s463_s23, %s356_s5 }
  0x1c   : > { %p353_p10 = pnand %p351_p6, %p337_p11  ;;  %p359_p0 = scmp.lt.s32.totalorder %s357_s6, %s350_s3 }
  0x1e   : > { %p354_p12 = pneg %p353_p10  ;;  %p360_p1 = por %p359_p0, %p358_p9 }
  0x20   : > { %p361_p2 = pnand %p360_p1, %p354_p12 }
  0x22   : > { %364 = shalt.err (!%p361_p2)
}
  0x23   : > { %s402_s12 = smov 128   ;;  %s403_s13 = smov 8  }
  0x24   : > { %293 = dma.hbm_to_vmem [thread:$0]  (!%p465_p8), %s461_s21, 256, %s463_s23, %s470_s25, %s402_s12, %s402_s12, %s403_s13  }
  0x25   : > { %p103_p11 = scmp.lt.s32.totalorder %s399_s9, 3  ;;  %p528_p13 = scmp.ge.s32.totalorder %s399_s9, 1 }
  0x27   : > { %p104_p3 = pnand %p528_p13, %p103_p11 }
  0x28   : > { %s109_s16 = sand.u32 (!%p104_p3), 1, %s391_s7  }
  0x29   : > { %107 = sbr.rel (%p104_p3) target bundleno = 205 (0xcd), region = 24  ;;  %s281_s17 = sshll.u32 (!%p104_p3), %s109_s16, 4 }
  0x2a   : > { %s110_s18 = scalar_lea.sflag (!%p104_p3), [#allocation3], %s109_s16  ;;  %s113_s19 = scalar_lea.vmem (!%p104_p3), [#allocation2], %s281_s17 }
  0x30   : > { %382 = dma.done.wait (%p452_p7), %s110_s18, 256  }
  0x31   : > { %384 = vsyncadd (%p452_p7), %s110_s18, 4294967040  ;;  %v137_v0 = vld [vmem:[%s113_s19] sm:$0xff]  ;;  %v138_v2 = vld [vmem:[%s113_s19 + $0x8] sm:$0x3f]  ;;  %s404_s9 = smov 127   ;;  %s405_s20 = smov 126  }
  0x32   : > { %v141_v1 = vld [vmem:[%s113_s19 + $0x2] sm:$0xff]  ;;  %v142_v5 = vld [vmem:[%s113_s19 + $0xa] sm:$0x3f]  ;;  %p132_p7 = scmp.lt.s32.totalorder %s435_s10, 1  ;;  %vm203_vm2 = vcmask 113664   ;;  %vm205_vm5 = vcmask 111616  }
  0x33   : > { %v149_v3 = vsub.f32 %v137_v0, %v141_v1  ;;  %v140_v4 = vld [vmem:[%s113_s19 + $0x9] sm:$0x3f]  ;;  %v139_v6 = vld [vmem:[%s113_s19 + $0x1] sm:$0xff]  ;;  %v150_v9 = vsub.f32 %v138_v2, %v142_v5 }
  0x34   : > { %v144_v7 = vadd.f32 %v140_v4, %v138_v2  ;;  %v143_v8 = vadd.f32 %v139_v6, %v137_v0  ;;  %s534_s10 = smov (!%p132_p7, %s435_s10), 1 }
  0x35   : > { %163 = vrot.lane.b32.xlu0 %v149_v3, %s404_s9  ;;  %s287_s15 = sshll.u32 %s534_s10, 4 }
  0x36   : > { %v145_v10 = vadd.f32 %v143_v8, %v139_v6  ;;  %v146_v11 = vadd.f32 %v144_v7, %v140_v4  ;;  %s136_s23 = scalar_lea.vmem %s525_s1, %s287_s15 }
  0x38   : > { %v147_v12 = vadd.f32 %v145_v10, %v141_v1  ;;  %v148_v13 = vadd.f32 %v146_v11, %v142_v5 }
  0x39   : > { %165 = vrot.lane.b32.xlu0 %v150_v9, %s404_s9 }
  0x3a   : > { %153 = vrot.lane.b32.xlu1 %v147_v12, %s405_s20 }
  0x3d   : > { %173 = vrot.lane.b32.xlu0 %v149_v3, %s405_s20 }
  0x3e   : > { %155 = vrot.lane.b32.xlu1 %v148_v13, %s405_s20 }
  0x42   : > { %175 = vrot.lane.b32.xlu1 %v150_v9, %s405_s20 }
  0xa7   : > { %v164_v14 = vpop.permute.xlu0 %163 }
  0xa8   : > { %v169_v15 = vadd.f32 %v164_v14, %v149_v3 }
  0xaa   : > { %v171_v18 = vadd.f32 %v169_v15, %v164_v14 }
  0xab   : > { %v166_v16 = vpop.permute.xlu0 %165 }
  0xac   : > { %v154_v17 = vpop.permute.xlu1 %153  ;;  %v170_v20 = vadd.f32 %v166_v16, %v150_v9 }
  0xad   : > { %v159_v19 = vsub.f32 %v147_v12, %v154_v17 }
  0xae   : > { %v172_v26 = vadd.f32 %v170_v20, %v166_v16 }
  0xaf   : > { %v174_v21 = vpop.permute.xlu0 %173  ;;  %v181_v24 = vmul.f32 %v159_v19, %v159_v19 }
  0xb0   : > { %v179_v22 = vadd.f32 %v174_v21, %v171_v18  ;;  %v156_v23 = vpop.permute.xlu1 %155 }
  0xb1   : > { %v160_v27 = vsub.f32 %v148_v13, %v156_v23 }
  0xb2   : > { %v183_v25 = vmul.f32 %v179_v22, %v179_v22 }
  0xb3   : > { %v182_v31 = vmul.f32 %v160_v27, %v160_v27 }
  0xb4   : > { %v185_v28 = vadd.f32 %v183_v25, %v181_v24  ;;  %v176_v29 = vpop.permute.xlu1 %175 }
  0xb5   : > { %v180_v30 = vadd.f32 %v176_v29, %v172_v26 }
  0xb6   : > { %331 = vrsqrt.f32 %v185_v28  ;;  %vm189_vm0 = vcmp.eq.f32.partialorder %v185_v28, inf  ;;  %v192_v36 = vand.u32 2147483648, %v185_v28  ;;  %vm191_vm1 = vcmp.eq.f32.partialorder %v185_v28, 0.0 }
  0xb7   : > { %v184_v32 = vmul.f32 %v180_v30, %v180_v30 }
  0xb9   : > { %v186_v33 = vadd.f32 %v184_v32, %v182_v31 }
  0xbb   : > { %333 = vrsqrt.f32 %v186_v33  ;;  %vm196_vm3 = vcmp.eq.f32.partialorder %v186_v33, inf  ;;  %v199_v42 = vand.u32 2147483648, %v186_v33  ;;  %vm198_vm4 = vcmp.eq.f32.partialorder %v186_v33, 0.0 }
  0xc0   : > { %v332_v34 = vpop.eup %331 }
  0xc1   : > { %v188_v35 = vmul.f32 %v332_v34, %v185_v28 }
  0xc3   : > { %v190_v37 = vsel %vm189_vm0, %v185_v28, %v188_v35 }
  0xc4   : > { %v193_v38 = vsel %vm191_vm1, %v192_v36, %v190_v37 }
  0xc5   : > { %v334_v39 = vpop.eup %333  ;;  %v201_v40 = vmul.f32 2.0, %v193_v38 }
  0xc6   : > { %v195_v41 = vmul.f32 %v334_v39, %v186_v33 }
  0xc7   : > { %204 = vst.msk [vmem:[%s136_s23] sm:$0xff] %vm203_vm2, %v201_v40 }
  0xc8   : > { %v197_v43 = vsel %vm196_vm3, %v186_v33, %v195_v41 }
  0xc9   : > { %v200_v44 = vsel %vm198_vm4, %v199_v42, %v197_v43 }
  0xca   : > { %v202_v45 = vmul.f32 2.0, %v200_v44 }
  0xcc   : > { %206 = vst.msk [vmem:[%s136_s23 + $0x8] sm:$0x3f] %vm205_vm5, %v202_v45 }
  0xcd PF: > { %p11_p8 = scmp.ge.s32.totalorder %s438_s11, 4   ;;  %s529_s6 = smov %s391_s7 }
  0xce   : > { %s530_s7 = smov %s395_s8  ;;  %s531_s8 = smov %s448_s14 }
  0xcf   : > { %s532_s9 = smov %s438_s11  ;;  %13 = sbr.rel (!%p11_p8) target bundleno = 3 (0x3), region = 64 }
  0xd6   :  { %228 = vsyncpa [#allocation3], 1 }
  0xd7   :  { %230 = vsyncpa [#allocation3 + $0x1], 1 }

</bundles_post_ra>
